<compile_context>
chip_gen: v5e
topology: v5e:2x2
jax: 0.10.0
libtpu: 0.0.40
codegen_flags: <defaults>
</compile_context>

<pallas_src>
import functools

import numpy as np
import jax
import jax.numpy as jnp
from jax.experimental import pallas as pl
from jax.experimental.pallas import tpu as pltpu


def _round_up(x, m):
    return ((x + m - 1) // m) * m


def _critic_kernel(state_ref, action_ref, w_ref, q_ref, *, dims, offs):
    """Fused 3-layer critic MLP on one batch tile (batch on the lane axis).

    state_ref : (ds, TB)     f32   state^T
    action_ref: (da, TB)     f32   action^T
    w_ref     : (R, C)       f32   packed transposed params (see pack_params)
    q_ref     : (n_out, TB)  f32   q^T
    """
    ds, da, f0, f1, n_out = dims

    xT = state_ref[...]       # (ds, TB)
    aT = action_ref[...]      # (da, TB)

    # ---- layer 1: h1^T = relu(W1^T @ x^T + b1) ------------------------------
    w1t = w_ref[offs["w1t"]:offs["w1t"] + f0, :ds]      # (f0, ds)
    b1 = w_ref[offs["b1"]:offs["b1"] + f0, :1]          # (f0, 1)
    h1 = jnp.maximum(
        jnp.dot(w1t, xT, preferred_element_type=jnp.float32) + b1, 0.0)

    # ---- layer 2: h2^T = relu(W2s^T @ h1^T + W2a^T @ a^T + b2) --------------
    # Two summed matmuls -- no lane-axis concat (MXU has plenty of slack here).
    w2st = w_ref[offs["w2st"]:offs["w2st"] + f1, :f0]   # (f1, f0)
    w2at = w_ref[offs["w2at"]:offs["w2at"] + f1, :da]   # (f1, da)
    b2 = w_ref[offs["b2"]:offs["b2"] + f1, :1]          # (f1, 1)
    h2 = jnp.maximum(
        jnp.dot(w2st, h1, preferred_element_type=jnp.float32)
        + jnp.dot(w2at, aT, preferred_element_type=jnp.float32)
        + b2, 0.0)

    # ---- layer 3: q^T = W3^T @ h2^T + b3 ------------------------------------
    w3t = w_ref[offs["w3t"]:offs["w3t"] + n_out, :f1]   # (n_out, f1)
    b3 = w_ref[offs["b3"]:offs["b3"] + n_out, :1]       # (n_out, 1)
    q = jnp.dot(w3t, h2, preferred_element_type=jnp.float32) + b3

    q_ref[...] = q.astype(q_ref.dtype)


def pack_params(params):
    """Pack all (transposed) weights/biases into one (R, C) f32 buffer.

    Every segment starts at an 8-aligned row offset so in-kernel slices are
    sublane-aligned.  Matrices are stored transposed (out-features on rows)
    to match the batch-on-lanes kernel layout; biases are column vectors.
    W2s and W2a stay separate segments (layer 2 = two summed matmuls).
    Returns (wpack, offsets) where offsets maps name -> starting row.
    """
    mats = [
        ("w1t", params["w1"].T),      # (f0, ds)
        ("b1", params["b1"].T),       # (f0, 1)
        ("w2st", params["w2s"].T),    # (f1, f0)
        ("w2at", params["w2a"].T),    # (f1, da)
        ("b2", params["b2s"].T),      # (f1, 1)
        ("w3t", params["w3"].T),      # (n_out, f1)
        ("b3", params["b3"].T),       # (n_out, 1)
    ]
    C = max(int(m.shape[1]) for _, m in mats)

    segs, offsets, row = [], {}, 0
    for name, m in mats:
        r, c = int(m.shape[0]), int(m.shape[1])
        offsets[name] = row
        pad_r = _round_up(r, 8)
        seg = jnp.zeros((pad_r, C), jnp.float32).at[:r, :c].set(
            m.astype(jnp.float32))
        segs.append(seg)
        row += pad_r
    return jnp.concatenate(segs, axis=0), offsets


def critic_forward(state, action, wpack, offsets, dims, *, block_b=None):
    """Fused critic MLP, batch-on-lanes layout, batch-blocked 'parallel' grid."""
    ds, da, f0, f1, n_out = dims
    state = jnp.asarray(state, jnp.float32)     # matches torch .float()
    action = jnp.asarray(action, jnp.float32)
    B = state.shape[0]

    # Batch lives on the 128-lane axis.  The kernel is per-step-overhead bound
    # (~61 KB moved per step), so make tiles as big as possible: a single grid
    # step for small/medium batches; for big batches an even number of large
    # tiles so the parallel axis can shard across both v7x TensorCores.
    if block_b is None:
        b_lanes = _round_up(B, 128)
        if b_lanes <= 4096:
            block_b = b_lanes
        else:
            n_steps = max(2, 2 * pl.cdiv(b_lanes, 2 * 8192))
            block_b = _round_up(pl.cdiv(b_lanes, n_steps), 128)
    block_b = max(128, _round_up(int(block_b), 128))

    Bp = _round_up(B, block_b)
    if Bp != B:
        state = jnp.pad(state, ((0, Bp - B), (0, 0)))
        action = jnp.pad(action, ((0, Bp - B), (0, 0)))

    # Layout plumbing in the wrapper: batch -> lanes.
    state_t = state.T        # (ds, Bp)
    action_t = action.T      # (da, Bp)

    R, C = wpack.shape
    grid = (Bp // block_b,)

    kernel = functools.partial(_critic_kernel, dims=dims, offs=offsets)

    q_t = pl.pallas_call(
        kernel,
        out_shape=jax.ShapeDtypeStruct((n_out, Bp), jnp.float32),
        grid=grid,
        in_specs=[
            pl.BlockSpec((ds, block_b), lambda i: (0, i)),   # state^T: batch-blocked
            pl.BlockSpec((da, block_b), lambda i: (0, i)),   # action^T: batch-blocked
            # Grid-invariant packed weights: VMEM-resident, single-buffered.
            pl.BlockSpec((R, C), lambda i: (0, 0),
                         pipeline_mode=pl.Buffered(1)),
        ],
        out_specs=pl.BlockSpec((n_out, block_b), lambda i: (0, i)),
        compiler_params=pltpu.CompilerParams(
            dimension_semantics=("parallel",)),
    )(state_t, action_t, wpack)

    q = q_t[:, :B].T         # (B, n_out)
    # torch.squeeze(q): drop all size-1 dims (trailing n_output=1 dim here).
    return jnp.squeeze(q)


def init_params(key, dim_state, dim_action, features, n_output):
    """Init matching the PyTorch module: weights of h1/h2_s/h2_a uniform
    +-1/sqrt(fan_in), h3 weight uniform +-0.003.  Biases of h1/h2_s/h3 keep
    torch's *default* nn.Linear bias init (uniform +-1/sqrt(fan_in)); the
    module only re-initializes the h3 WEIGHT, so the h3 bias bound is
    1/sqrt(features[1]).  h2_a has no bias."""
    f0, f1 = features
    ks = jax.random.split(key, 8)

    def unif(k, shape, bound):
        return jax.random.uniform(k, shape, jnp.float32, minval=-bound, maxval=bound)

    b_h1 = 1.0 / np.sqrt(dim_state)
    b_h2s = 1.0 / np.sqrt(f0)
    b_h2a = 1.0 / np.sqrt(dim_action)
    b_h3w = 0.003
    b_h3b = 1.0 / np.sqrt(f1)

    return {
        # stored as (in, out) == transposed torch weight
        "w1": unif(ks[0], (dim_state, f0), b_h1),
        "b1": unif(ks[1], (1, f0), b_h1),
        "w2s": unif(ks[2], (f0, f1), b_h2s),
        "b2s": unif(ks[3], (1, f1), b_h2s),
        "w2a": unif(ks[4], (dim_action, f1), b_h2a),
        "w3": unif(ks[5], (f1, n_output), b_h3w),
        "b3": unif(ks[6], (1, n_output), b_h3b),
    }


def reference_forward(state, action, params):
    f1 = jax.nn.relu(state @ params["w1"] + params["b1"])
    f2 = jax.nn.relu(f1 @ params["w2s"] + params["b2s"] + action @ params["w2a"])
    q = f2 @ params["w3"] + params["b3"]
    return jnp.squeeze(q)


if __name__ == "__main__":
    # Small shapes consistent with a DDPG critic:
    #   input_shape=(dim_state,), action_shape=(dim_action,), features=(f0,f1),
    #   output_shape=(1,)
    B, dim_state, dim_action = 8, 24, 6
    features = (32, 32)
    n_output = 1

    key = jax.random.PRNGKey(0)
    k_s, k_a, k_p = jax.random.split(key, 3)

    state = jax.random.normal(k_s, (B, dim_state), jnp.float32)
    action = jax.random.normal(k_a, (B, dim_action), jnp.float32)
    params = init_params(k_p, dim_state, dim_action, features, n_output)

    wpack, offsets = pack_params(params)
    dims = (dim_state, dim_action, features[0], features[1], n_output)

    q = critic_forward(state, action, wpack, offsets, dims)
    q = jax.block_until_ready(q)

    q_ref = reference_forward(state, action, params)
    np.testing.assert_allclose(np.asarray(q), np.asarray(q_ref), rtol=1e-5, atol=1e-5)

    print("KERNEL_OK")
</pallas_src>

<mosaic_0001>
module attributes {stable_mosaic.version = 11 : i64} {
  func.func @_critic_kernel(%arg0: i32, %arg1: memref<24x128xf32, #tpu.memory_space<vmem>>, %arg2: memref<6x128xf32, #tpu.memory_space<vmem>>, %arg3: memref<176x32xf32, #tpu.memory_space<vmem>>, %arg4: memref<1x128xf32, #tpu.memory_space<vmem>>) attributes {dimension_semantics = [#tpu.dimension_semantics<parallel>], iteration_bounds = array<i64: 1>, scalar_prefetch = 0 : i64, scratch_operands = 0 : i64, tpu.core_type = #tpu.core_type<tc>, window_params = [{transform_indices = @transform_0, window_bounds = array<i64: 24, 128>}, {transform_indices = @transform_1, window_bounds = array<i64: 6, 128>}, {pipeline_mode = #tpu.pipeline_mode<synchronous>, transform_indices = @transform_2, window_bounds = array<i64: 176, 32>}, {transform_indices = @transform_3, window_bounds = array<i64: 1, 128>}]} {
    %c0 = arith.constant 0 : index
    %c0_0 = arith.constant 0 : index
    %0 = vector.load %arg1[%c0, %c0_0] : memref<24x128xf32, #tpu.memory_space<vmem>>, vector<24x128xf32>
    %c0_1 = arith.constant 0 : index
    %c0_2 = arith.constant 0 : index
    %1 = vector.load %arg2[%c0_1, %c0_2] : memref<6x128xf32, #tpu.memory_space<vmem>>, vector<6x128xf32>
    %c0_3 = arith.constant 0 : index
    %c0_4 = arith.constant 0 : index
    %2 = vector.load %arg3[%c0_3, %c0_4] : memref<176x32xf32, #tpu.memory_space<vmem>>, vector<32x24xf32>
    %c32 = arith.constant 32 : index
    %c0_5 = arith.constant 0 : index
    %3 = vector.load %arg3[%c32, %c0_5] : memref<176x32xf32, #tpu.memory_space<vmem>>, vector<32x1xf32>
    %cst = arith.constant dense<0.000000e+00> : vector<32x128xf32>
    %4 = tpu.matmul %2, %0, %cst {dimension_numbers = #tpu.dot_dimension_numbers<[1], [0], [0], [1], [0, 0, 1, 1], [], []>} : vector<32x24xf32>, vector<24x128xf32>, vector<32x128xf32> -> vector<32x128xf32>
    %5 = vector.broadcast %3 : vector<32x1xf32> to vector<32x128xf32>
    %6 = arith.addf %4, %5 : vector<32x128xf32>
    %cst_6 = arith.constant 0.000000e+00 : f32
    %7 = vector.broadcast %cst_6 : f32 to vector<32x128xf32>
    %8 = arith.maximumf %6, %7 : vector<32x128xf32>
    %c64 = arith.constant 64 : index
    %c0_7 = arith.constant 0 : index
    %9 = vector.load %arg3[%c64, %c0_7] : memref<176x32xf32, #tpu.memory_space<vmem>>, vector<32x32xf32>
    %c96 = arith.constant 96 : index
    %c0_8 = arith.constant 0 : index
    %10 = vector.load %arg3[%c96, %c0_8] : memref<176x32xf32, #tpu.memory_space<vmem>>, vector<32x6xf32>
    %c128 = arith.constant 128 : index
    %c0_9 = arith.constant 0 : index
    %11 = vector.load %arg3[%c128, %c0_9] : memref<176x32xf32, #tpu.memory_space<vmem>>, vector<32x1xf32>
    %cst_10 = arith.constant dense<0.000000e+00> : vector<32x128xf32>
    %12 = tpu.matmul %9, %8, %cst_10 {dimension_numbers = #tpu.dot_dimension_numbers<[1], [0], [0], [1], [0, 0, 1, 1], [], []>} : vector<32x32xf32>, vector<32x128xf32>, vector<32x128xf32> -> vector<32x128xf32>
    %cst_11 = arith.constant dense<0.000000e+00> : vector<32x128xf32>
    %13 = tpu.matmul %10, %1, %cst_11 {dimension_numbers = #tpu.dot_dimension_numbers<[1], [0], [0], [1], [0, 0, 1, 1], [], []>} : vector<32x6xf32>, vector<6x128xf32>, vector<32x128xf32> -> vector<32x128xf32>
    %14 = arith.addf %12, %13 : vector<32x128xf32>
    %15 = vector.broadcast %11 : vector<32x1xf32> to vector<32x128xf32>
    %16 = arith.addf %14, %15 : vector<32x128xf32>
    %cst_12 = arith.constant 0.000000e+00 : f32
    %17 = vector.broadcast %cst_12 : f32 to vector<32x128xf32>
    %18 = arith.maximumf %16, %17 : vector<32x128xf32>
    %c160 = arith.constant 160 : index
    %c0_13 = arith.constant 0 : index
    %19 = vector.load %arg3[%c160, %c0_13] : memref<176x32xf32, #tpu.memory_space<vmem>>, vector<1x32xf32>
    %c168 = arith.constant 168 : index
    %c0_14 = arith.constant 0 : index
    %20 = vector.load %arg3[%c168, %c0_14] : memref<176x32xf32, #tpu.memory_space<vmem>>, vector<1x1xf32>
    %cst_15 = arith.constant dense<0.000000e+00> : vector<1x128xf32>
    %21 = tpu.matmul %19, %18, %cst_15 {dimension_numbers = #tpu.dot_dimension_numbers<[1], [0], [0], [1], [0, 0, 1, 1], [], []>} : vector<1x32xf32>, vector<32x128xf32>, vector<1x128xf32> -> vector<1x128xf32>
    %22 = vector.broadcast %20 : vector<1x1xf32> to vector<1x128xf32>
    %23 = arith.addf %21, %22 : vector<1x128xf32>
    %c0_16 = arith.constant 0 : index
    %c0_17 = arith.constant 0 : index
    %24 = vector.load %arg4[%c0_16, %c0_17] : memref<1x128xf32, #tpu.memory_space<vmem>>, vector<1x128xf32>
    tpu.vector_store %arg4[%c0_16, %c0_17], %23 {strides = array<i32>} : memref<1x128xf32, #tpu.memory_space<vmem>>, vector<1x128xf32>,
    return
  }
  func.func @transform_0(%arg0: i32) -> (i32, i32) {
    %c0_i32 = arith.constant 0 : i32
    %c0_i32_0 = arith.constant 0 : i32
    return %c0_i32, %arg0 : i32, i32
  }
  func.func @transform_1(%arg0: i32) -> (i32, i32) {
    %c0_i32 = arith.constant 0 : i32
    %c0_i32_0 = arith.constant 0 : i32
    return %c0_i32, %arg0 : i32, i32
  }
  func.func @transform_2(%arg0: i32) -> (i32, i32) {
    %c0_i32 = arith.constant 0 : i32
    %c0_i32_0 = arith.constant 0 : i32
    %c0_i32_1 = arith.constant 0 : i32
    return %c0_i32, %c0_i32_0 : i32, i32
  }
  func.func @transform_3(%arg0: i32) -> (i32, i32) {
    %c0_i32 = arith.constant 0 : i32
    %c0_i32_0 = arith.constant 0 : i32
    return %c0_i32, %arg0 : i32, i32
  }
}

</mosaic_0001>

<bundles_post_ra>
// kernel: tpu_custom_call.1
= control target key start
LH: loop header
LB: loop body
LE: loop exit
PB: predicated region body
PF: predicated region fallthrough
CT: control target
= control target key end

     0   :  { %v317_v2 = vmov 0   ;;  %vm47_vm0 = vcmask 195584   ;;  %s429_s0 = inlined_call_operand.vmem [shape: f32[24,128], index: 0, kind: input, shape index: {}]   ;;  %s430_s1 = inlined_call_operand.vmem [shape: f32[6,128], index: 1, kind: input, shape index: {}]   ;;  %s431_s2 = inlined_call_operand.vmem [shape: f32[176,32], index: 2, kind: input, shape index: {}]   ;;  %s432_s3 = inlined_call_operand.hbm [shape: f32[1,128], index: 3, kind: output, shape index: {}]  }
   0x1   :  { %v17_v0 = vld [vmem:[%s429_s0 + $0x10] sm:$0xff]  ;;  %v16_v1 = vld [vmem:[%s429_s0 + $0x8] sm:$0xff]  ;;  %289 = vset.pattern.permute.xlu1 %v317_v2  ;;  %v15_v4 = vld [vmem:[%s429_s0] sm:$0xff]  ;;  %288 = vset.pattern.permute.xlu0 %v317_v2 }
   0x2   :  { %73 = vmatpush.msra.mxu0 %v17_v0  ;;  %v24_v3 = vld [vmem:[%s431_s2 + $0x28] sm:$0xff]  ;;  %v26_v5 = vld [vmem:[%s431_s2 + $0x38] sm:$0xff]  ;;  %v19_v6 = vld [vmem:[%s431_s2] sm:$0xff]  ;;  %290 = vset.pattern.permute.xlu2 %v317_v2 }
   0x3   :  { %34 = vperm.xlu1 %289, %v24_v3   ;;  %44 = vperm.xlu0 %288, %v26_v5  }
   0x4   :  { %74 = vmatpush.msra.mxu0 %v16_v1 }
   0x5   :  { %8 = vsyncpa [#allocation3], 0  ;;  %v23_v7 = vld [vmem:[%s431_s2 + $0x20] sm:$0xff]  ;;  %v25_v8 = vld [vmem:[%s431_s2 + $0x30] sm:$0xff]  ;;  %vm118_vm1 = vcmask 1045504   ;;  %vm105_vm2 = vcmask 48128  }
   0x6   :  { %75 = vmatpush.msra.mxu0 %v15_v4  ;;  %v20_v9 = vld [vmem:[%s431_s2 + $0x8] sm:$0xff]  ;;  %v101_v10 = vld [vmem:[%s431_s2 + $0x80] sm:$0xff]  ;;  %v21_v12 = vld [vmem:[%s431_s2 + $0x10] sm:$0xff]  ;;  %vm151_vm3 = vcmask 261120   ;;  %s318_s7 = smov [#allocation2]   ;;  %s259_s11 = sshll.u32 %s432_s3, 4  ;;  %s260_s11 = int_to_ptr.hbm [resolvable:$true] %s259_s11 }
   0x7   :  { %268 = vmatmul.msk.f32.vlgmr.msra.gmra.mxu0 %vm47_vm0, %v19_v6  ;;  %v102_v11 = vld [vmem:[%s431_s2 + $0x88] sm:$0xff]  ;;  %v22_v13 = vld [vmem:[%s431_s2 + $0x18] sm:$0xff]  ;;  %v18_v14 = vld [vmem:[%s430_s1] sm:$0x3f]  ;;  %s257_s8 = sshll.u32 %s318_s7, 4  ;;  %s258_s8 = int_to_ptr.vmem [resolvable:$true] %s257_s8 }
   0x8   :  { %272 = vmatpush.msk.msra.mxu1 %vm118_vm1, %v18_v14  ;;  %v97_v15 = vld [vmem:[%s431_s2 + $0x60] sm:$0xff]  ;;  %v98_v17 = vld [vmem:[%s431_s2 + $0x68] sm:$0xff]  ;;  %v99_v18 = vld [vmem:[%s431_s2 + $0x70] sm:$0xff] }
   0x9   :  { %273 = vmatmul.msk.f32.vlgmr.msra.gmra.mxu1 %vm105_vm2, %v97_v15  ;;  %v100_v21 = vld [vmem:[%s431_s2 + $0x78] sm:$0xff]  ;;  %v103_v32 = vld [vmem:[%s431_s2 + $0x90] sm:$0xff]  ;;  %v93_v37 = vld [vmem:[%s431_s2 + $0x40] sm:$0xff] }
   0xa   :  { %v104_v24 = vld [vmem:[%s431_s2 + $0x98] sm:$0xff]  ;;  %v222_v39 = vld [vmem:[%s431_s2 + $0xa8] sm:$0x1]  ;;  %v95_v41 = vld [vmem:[%s431_s2 + $0x50] sm:$0xff] }
   0xb   :  { %29 = vperm.xlu1 %289, %v23_v7   ;;  %39 = vperm.xlu0 %288, %v25_v8   ;;  %v96_v38 = vld [vmem:[%s431_s2 + $0x58] sm:$0xff]  ;;  %v94_v40 = vld [vmem:[%s431_s2 + $0x48] sm:$0xff]  ;;  %v221_v2 = vld [vmem:[%s431_s2 + $0xa0] sm:$0x1] }
   0xc   :  { %210 = vperm.xlu2 %290, %v104_v24  }
   0xf   :  { %269 = vmatmul.msk.f32.gmra.mxu0 %vm47_vm0, %v20_v9 }
  0x11   :  { %274 = vmatmul.msk.f32.gmra.mxu1 %vm105_vm2, %v98_v17 }
  0x13   :  { %195 = vperm.xlu1 %289, %v101_v10   ;;  %200 = vperm.xlu0 %288, %v102_v11  }
  0x14   :  { %205 = vperm.xlu2 %290, %v103_v32  }
  0x17   :  { %270 = vmatmul.msk.f32.gmra.mxu0 %vm47_vm0, %v21_v12 }
  0x19   :  { %275 = vmatmul.msk.f32.gmra.mxu1 %vm105_vm2, %v99_v18 }
  0x1c   :  { %225 = vperm.xlu2 %290, %v222_v39  }
  0x1f   :  { %271 = vmatmul.msk.f32.gmra.mxu0 %vm47_vm0, %v22_v13 }
  0x21   :  { %276 = vmatmul.msk.f32.gmra.mxu1 %vm105_vm2, %v100_v21 }
  0x66   :  { %v211_v49 = vpop.permute.xlu2 %210 }
  0x6e   :  { %v206_v58 = vpop.permute.xlu2 %205 }
  0x75   :  { %v45_v20 = vpop.permute.xlu0 %44  ;;  %v35_v22 = vpop.permute.xlu1 %34 }
  0x76   :  { %v226_v3 = vpop.permute.xlu2 %225 }
  0x7d   :  { %v40_v25 = vpop.permute.xlu0 %39  ;;  %v30_v29 = vpop.permute.xlu1 %29 }
  0x84   :  { %v77_v16 = vpop.f32.mrf.mxu0 }
  0x85   :  { %v78_v33 = vadd.f32 %v77_v16, %v30_v29  ;;  %v201_v57 = vpop.permute.xlu0 %200  ;;  %v196_v61 = vpop.permute.xlu1 %195 }
  0x86   :  { %v139_v42 = vpop.f32.mrf.mxu1 }
  0x87   :  { %v89_v36 = vmax.f32 %v78_v33, 0.0 }
  0x8c   :  { %v80_v19 = vpop.f32.mrf.mxu0 }
  0x8d   :  { %v81_v30 = vadd.f32 %v80_v19, %v35_v22 }
  0x8e   :  { %v142_v43 = vpop.f32.mrf.mxu1 }
  0x8f   :  { %v90_v35 = vmax.f32 %v81_v30, 0.0 }
  0x94   :  { %v83_v23 = vpop.f32.mrf.mxu0 }
  0x95   :  { %v84_v27 = vadd.f32 %v83_v23, %v40_v25 }
  0x96   :  { %v145_v44 = vpop.f32.mrf.mxu1 }
  0x97   :  { %v91_v34 = vmax.f32 %v84_v27, 0.0 }
  0x9c   :  { %v86_v26 = vpop.f32.mrf.mxu0 }
  0x9d   :  { %v87_v28 = vadd.f32 %v86_v26, %v45_v20 }
  0x9e   :  { %v148_v45 = vpop.f32.mrf.mxu1 }
  0x9f   :  { %v92_v31 = vmax.f32 %v87_v28, 0.0 }
  0xa1   :  { %176 = vmatpush.msra.mxu2 %v92_v31  ;;  %282 = vmatpush.msra.mxu3 %v92_v31 }
  0xa3   :  { %177 = vmatpush.msra.mxu2 %v91_v34  ;;  %283 = vmatpush.msra.mxu3 %v91_v34 }
  0xa5   :  { %178 = vmatpush.msra.mxu2 %v90_v35  ;;  %284 = vmatpush.msra.mxu3 %v90_v35 }
  0xa7   :  { %179 = vmatpush.msra.mxu2 %v89_v36  ;;  %285 = vmatpush.msra.mxu3 %v89_v36 }
  0xa8   :  { %277 = vmatmul.msk.f32.vlgmr.msra.gmra.mxu2 %vm151_vm3, %v93_v37  ;;  %280 = vmatmul.msk.f32.vlgmr.msra.gmra.mxu3 %vm151_vm3, %v96_v38 }
  0xb0   :  { %278 = vmatmul.msk.f32.gmra.mxu2 %vm151_vm3, %v94_v40 }
  0xb8   :  { %279 = vmatmul.msk.f32.gmra.mxu2 %vm151_vm3, %v95_v41 }
 0x12b   :  { %v181_v46 = vpop.f32.mrf.mxu2  ;;  %v190_v47 = vpop.f32.mrf.mxu3 }
 0x12c   :  { %v191_v48 = vadd.f32 %v190_v47, %v148_v45  ;;  %v182_v55 = vadd.f32 %v181_v46, %v139_v42 }
 0x12e   :  { %v216_v50 = vadd.f32 %v211_v49, %v191_v48  ;;  %v213_v63 = vadd.f32 %v196_v61, %v182_v55 }
 0x130   :  { %v220_v51 = vmax.f32 %v216_v50, 0.0  ;;  %v217_v1 = vmax.f32 %v213_v63, 0.0 }
 0x132   :  { %243 = vmatpush.msrb.mxu3 %v220_v51 }
 0x133   :  { %v184_v52 = vpop.f32.mrf.mxu2 }
 0x134   :  { %v185_v53 = vadd.f32 %v184_v52, %v142_v43 }
 0x136   :  { %v214_v60 = vadd.f32 %v201_v57, %v185_v53 }
 0x138   :  { %v218_v0 = vmax.f32 %v214_v60, 0.0 }
 0x13b   :  { %v187_v54 = vpop.f32.mrf.mxu2 }
 0x13c   :  { %v188_v56 = vadd.f32 %v187_v54, %v145_v44 }
 0x13e   :  { %v215_v59 = vadd.f32 %v206_v58, %v188_v56 }
 0x140   :  { %v219_v62 = vmax.f32 %v215_v59, 0.0 }
 0x142   :  { %244 = vmatpush.msrb.mxu3 %v219_v62 }
 0x144   :  { %245 = vmatpush.msrb.mxu3 %v218_v0 }
 0x146   :  { %246 = vmatpush.msrb.mxu3 %v217_v1 }
 0x147   :  { %281 = vmatmul.msk.f32.vlgmr.msrb.gmra.mxu3 %vm151_vm3, %v221_v2 }
 0x1ca   :  { %v248_v4 = vpop.f32.mrf.mxu3 }
 0x1cb   :  { %v249_v5 = vadd.f32 %v248_v4, %v226_v3 }
 0x1cd   :  { %251 = vst [vmem:[#allocation2] sm:$0x1] %v249_v5 }
 0x1ce   :  { %262 = dma.vmem_to_hbm [thread:$0]  %s258_s8, 16, %s260_s11, [#allocation3]  }
 0x1cf   :  { %315 = dma.done.wait [#allocation3], 16  }
 0x1d0   :  { %316 = vsyncadd [#allocation3], 4294967280 }
 0x1d1   :  { %267 = vsyncpa [#allocation3], 1 }

</bundles_post_ra>
